<compile_context>
chip_gen: v7x
topology: tpu7x:2x2x1
jax: 0.10.0
libtpu: 0.0.40
codegen_flags: <defaults>
</compile_context>

<pallas_src>
import functools

import jax
import jax.numpy as jnp
from jax.experimental import pallas as pl
from jax.experimental.pallas import tpu as pltpu


def _round_up(a, b):
    return ((a + b - 1) // b) * b


def _patch_embed_kernel(p_ref, w_ref, b_ref, o_ref):
    # p_ref: (tm, K)  bf16  ; w_ref: (K, N_pad) bf16
    # b_ref: (1, N_pad) f32 ; o_ref: (tm, N_pad) out dtype
    acc = jnp.dot(p_ref[...], w_ref[...], preferred_element_type=jnp.float32)
    o_ref[...] = (acc + b_ref[...]).astype(o_ref.dtype)


@functools.partial(jax.jit,
                   static_argnames=("patch_size", "tm", "compute_dtype", "out_dtype"))
def patch_embed_pallas(x, weight, bias, *, patch_size, tm=4096,
                       compute_dtype=jnp.bfloat16, out_dtype=None):
    """x: (B, C, H, W); weight: (embed_dim, C, ph, pw); bias: (embed_dim,)."""
    B, C, H, W = x.shape
    ph, pw = patch_size
    assert H % ph == 0 and W % pw == 0, "image size must be divisible by patch size"
    gh, gw = H // ph, W // pw
    num_patches = gh * gw
    embed_dim = weight.shape[0]
    K = C * ph * pw
    M = B * num_patches
    out_dtype = x.dtype if out_dtype is None else out_dtype

    # Lane-dense output: pad N to a 128 multiple only when needed.
    N_pad = embed_dim if embed_dim % 128 == 0 else _round_up(embed_dim, 128)

    # Row tile: big (amortize per-step overhead), multiple of 16 (bf16 sublane
    # packing) when tiling; if the whole M fits in one tile use M exactly
    # (full-dim block is always layout-legal, no padding, no ragged block).
    tm_base = _round_up(max(tm, 16), 16)
    tm_eff = M if M <= tm_base else tm_base
    grid_m = pl.cdiv(M, tm_eff)

    # Patch extraction: NCHW -> (B*num_patches, C*ph*pw), identical ordering to
    # conv(x).flatten(2).transpose(1,2).  Cast first so any materialized
    # intermediate (if the transpose doesn't fuse into the input DMA) is bf16.
    xc = x.astype(compute_dtype)
    patches = xc.reshape(B, C, gh, ph, gw, pw)
    patches = patches.transpose(0, 2, 4, 1, 3, 5).reshape(M, K)

    # conv weight (E, C, ph, pw) -> (K, E), lane-padded to (K, N_pad) if needed.
    w_flat = weight.reshape(embed_dim, K).T
    b_row = bias.reshape(1, embed_dim)
    if N_pad != embed_dim:
        w_flat = jnp.pad(w_flat, ((0, 0), (0, N_pad - embed_dim)))
        b_row = jnp.pad(b_row, ((0, 0), (0, N_pad - embed_dim)))
    w_flat = w_flat.astype(compute_dtype)
    b_row = b_row.astype(jnp.float32)

    out = pl.pallas_call(
        _patch_embed_kernel,
        out_shape=jax.ShapeDtypeStruct((M, N_pad), out_dtype),
        grid=(grid_m,),
        in_specs=[
            pl.BlockSpec((tm_eff, K), lambda i: (i, 0)),      # last dim == full K
            pl.BlockSpec((K, N_pad), lambda i: (0, 0)),       # resident weight
            pl.BlockSpec((1, N_pad), lambda i: (0, 0)),       # resident bias
        ],
        out_specs=pl.BlockSpec((tm_eff, N_pad), lambda i: (i, 0)),
        compiler_params=pltpu.CompilerParams(
            dimension_semantics=("parallel",),
            allow_input_fusion=[True, False, False],
        ),
    )(patches, w_flat, b_row)

    if N_pad != embed_dim:
        # TODO(synk): for embed_dim < 128 the lane slice is an extra copy; a
        # real model should consume the padded output and slice at the consumer.
        out = out[:, :embed_dim]
    return out.reshape(B, num_patches, embed_dim)


class PatchEmbedNew:
    """JAX/Pallas port of the PyTorch PatchEmbedNew (norm_layer=None)."""

    def __init__(self, img_size=16, patch_size=4, in_chans=4, embed_dim=32,
                 norm_layer=None, key=jax.random.PRNGKey(0)):
        self.img_size = (img_size, img_size)
        self.patch_size = (patch_size, patch_size)
        self.patches_resolution = [img_size // patch_size, img_size // patch_size]
        self.num_patches = self.patches_resolution[0] * self.patches_resolution[1]
        self.in_chans = in_chans
        self.embed_dim = embed_dim
        # deterministic param init (synthetic; shapes match nn.Conv2d(in,out,k,k))
        kw, kb = jax.random.split(key)
        fan_in = in_chans * patch_size * patch_size
        bound = 1.0 / jnp.sqrt(fan_in)
        self.weight = jax.random.uniform(
            kw, (embed_dim, in_chans, patch_size, patch_size),
            minval=-bound, maxval=bound, dtype=jnp.float32)
        self.bias = jax.random.uniform(
            kb, (embed_dim,), minval=-bound, maxval=bound, dtype=jnp.float32)
        # TODO(synk): norm_layer!=None (LayerNorm after projection) not implemented
        self.norm = None

    def __call__(self, x):
        B, C, H, W = x.shape
        assert H == self.img_size[0] and W == self.img_size[1], (
            f"Input image size ({H}*{W}) doesn't match model "
            f"({self.img_size[0]}*{self.img_size[1]}).")
        return patch_embed_pallas(x, self.weight, self.bias,
                                  patch_size=self.patch_size)


def _reference_f32(x, weight, bias, patch_size):
    # pure-JAX f32 reference: strided conv == patch matmul
    y = jax.lax.conv_general_dilated(
        x, weight, window_strides=patch_size, padding="VALID",
        dimension_numbers=("NCHW", "OIHW", "NCHW"))
    y = y + bias.reshape(1, -1, 1, 1)
    B, E, gh, gw = y.shape
    return y.reshape(B, E, gh * gw).transpose(0, 2, 1)


def _reference_quantized(x, weight, bias, patch_size, compute_dtype=jnp.bfloat16):
    # mirrors the kernel's bf16 operand cast + f32 accumulation exactly
    B, C, H, W = x.shape
    ph, pw = patch_size
    gh, gw = H // ph, W // pw
    E = weight.shape[0]
    K = C * ph * pw
    p = x.astype(compute_dtype).reshape(B, C, gh, ph, gw, pw)
    p = p.transpose(0, 2, 4, 1, 3, 5).reshape(B * gh * gw, K)
    wf = weight.reshape(E, K).T.astype(compute_dtype)
    out = jnp.dot(p, wf, preferred_element_type=jnp.float32) + bias.reshape(1, E)
    return out.reshape(B, gh * gw, E).astype(x.dtype)


if __name__ == "__main__":
    key = jax.random.PRNGKey(0)
    k_x, k_params = jax.random.split(key)

    B, C, H, W = 2, 4, 16, 16
    model = PatchEmbedNew(img_size=16, patch_size=4, in_chans=C, embed_dim=32,
                          key=k_params)
    x = jax.random.normal(k_x, (B, C, H, W), dtype=jnp.float32)

    out = jax.block_until_ready(model(x))
    assert out.shape == (B, model.num_patches, model.embed_dim)

    # Tight check vs a reference applying the same bf16 operand quantization
    # (isolates tiling / indexing correctness from bf16 rounding).
    ref_q = _reference_quantized(x, model.weight, model.bias, model.patch_size)
    assert jnp.allclose(out, ref_q, atol=1e-5, rtol=1e-5), "mismatch vs quantized ref"

    # Loose check vs the exact f32 conv reference (tolerance sized for bf16
    # operand rounding; accumulation is f32).
    ref = _reference_f32(x, model.weight, model.bias, model.patch_size)
    assert jnp.allclose(out, ref, atol=2e-2, rtol=2e-2), "mismatch vs f32 conv ref"

    print("KERNEL_OK")
</pallas_src>

<mosaic_0001>
module attributes {stable_mosaic.version = 11 : i64} {
  func.func @_patch_embed_kernel(%arg0: i32, %arg1: memref<32x64xbf16, #tpu.memory_space<vmem>>, %arg2: memref<64x128xbf16, #tpu.memory_space<vmem>>, %arg3: memref<1x128xf32, #tpu.memory_space<vmem>>, %arg4: memref<32x128xf32, #tpu.memory_space<vmem>>) attributes {dimension_semantics = [#tpu.dimension_semantics<parallel>], iteration_bounds = array<i64: 1>, scalar_prefetch = 0 : i64, scratch_operands = 0 : i64, tpu.core_type = #tpu.core_type<tc>, window_params = [{transform_indices = @transform_0, window_bounds = array<i64: 32, 64>}, {pipeline_mode = #tpu.pipeline_mode<synchronous>, transform_indices = @transform_1, window_bounds = array<i64: 64, 128>}, {pipeline_mode = #tpu.pipeline_mode<synchronous>, transform_indices = @transform_2, window_bounds = array<i64: 1, 128>}, {transform_indices = @transform_3, window_bounds = array<i64: 32, 128>}]} {
    %c0 = arith.constant 0 : index
    %c0_0 = arith.constant 0 : index
    %0 = vector.load %arg1[%c0, %c0_0] : memref<32x64xbf16, #tpu.memory_space<vmem>>, vector<32x64xbf16>
    %c0_1 = arith.constant 0 : index
    %c0_2 = arith.constant 0 : index
    %1 = vector.load %arg2[%c0_1, %c0_2] : memref<64x128xbf16, #tpu.memory_space<vmem>>, vector<64x128xbf16>
    %cst = arith.constant dense<0.000000e+00> : vector<32x128xf32>
    %2 = tpu.matmul %0, %1, %cst {dimension_numbers = #tpu.dot_dimension_numbers<[1], [0], [0], [1], [0, 0, 1, 1], [], []>} : vector<32x64xbf16>, vector<64x128xbf16>, vector<32x128xf32> -> vector<32x128xf32>
    %c0_3 = arith.constant 0 : index
    %c0_4 = arith.constant 0 : index
    %3 = vector.load %arg3[%c0_3, %c0_4] : memref<1x128xf32, #tpu.memory_space<vmem>>, vector<1x128xf32>
    %4 = vector.broadcast %3 : vector<1x128xf32> to vector<32x128xf32>
    %5 = arith.addf %2, %4 : vector<32x128xf32>
    %c0_5 = arith.constant 0 : index
    %c0_6 = arith.constant 0 : index
    %6 = vector.load %arg4[%c0_5, %c0_6] : memref<32x128xf32, #tpu.memory_space<vmem>>, vector<32x128xf32>
    tpu.vector_store %arg4[%c0_5, %c0_6], %5 {strides = array<i32>} : memref<32x128xf32, #tpu.memory_space<vmem>>, vector<32x128xf32>,
    return
  }
  func.func @transform_0(%arg0: i32) -> (i32, i32) {
    %c0_i32 = arith.constant 0 : i32
    %c0_i32_0 = arith.constant 0 : i32
    return %arg0, %c0_i32 : i32, i32
  }
  func.func @transform_1(%arg0: i32) -> (i32, i32) {
    %c0_i32 = arith.constant 0 : i32
    %c0_i32_0 = arith.constant 0 : i32
    %c0_i32_1 = arith.constant 0 : i32
    return %c0_i32, %c0_i32_0 : i32, i32
  }
  func.func @transform_2(%arg0: i32) -> (i32, i32) {
    %c0_i32 = arith.constant 0 : i32
    %c0_i32_0 = arith.constant 0 : i32
    %c0_i32_1 = arith.constant 0 : i32
    return %c0_i32, %c0_i32_0 : i32, i32
  }
  func.func @transform_3(%arg0: i32) -> (i32, i32) {
    %c0_i32 = arith.constant 0 : i32
    %c0_i32_0 = arith.constant 0 : i32
    return %arg0, %c0_i32 : i32, i32
  }
}

</mosaic_0001>

<bundles_post_ra>
// kernel: patch_embed_pallas.1
= control target key start
LH: loop header
LB: loop body
LE: loop exit
PB: predicated region body
PF: predicated region fallthrough
CT: control target
= control target key end

     0   :  { %vm69_vm0 = vcmask 523264   ;;  %s261_s0 = inlined_call_operand.vmem [shape: bf16[32,64], index: 0, kind: input, shape index: {}]   ;;  %s262_s1 = inlined_call_operand.vmem [shape: bf16[64,128], index: 1, kind: input, shape index: {}]   ;;  %s263_s2 = inlined_call_operand.vmem [shape: f32[1,128], index: 2, kind: input, shape index: {}]   ;;  %s264_s3 = inlined_call_operand.hbm [shape: f32[32,128], index: 3, kind: output, shape index: {}]  }
   0x1   :  { %v175_v0 = vld [vmem:[%s262_s1] sm:$0xff]   ;;  %v176_v1 = vld [vmem:[%s262_s1 + $0x8] sm:$0xff]   ;;  %v177_v2 = vld [vmem:[%s262_s1 + $0x10] sm:$0xff]  }
   0x2   :  { %160 = vmatprep.subr.bf16.mxu0 %v175_v0  ;;  %v179_v3 = vld [vmem:[%s261_s0] sm:$0xff]  }
   0x3   :  { %161 = vmatpush3.bf16.msra.mxu0 %v175_v0  ;;  %168 = vmatprep.mubr.msk.bf16.mxu0 %vm69_vm0, %v179_v3 }
   0x4   :  { %162 = vmatprep.subr.bf16.mxu0 %v176_v1 }
   0x5   :  { %8 = vsyncpa [#allocation3], 0  ;;  %v178_v4 = vld [vmem:[%s262_s1 + $0x18] sm:$0xff]   ;;  %v180_v5 = vld [vmem:[%s261_s0 + $0x8] sm:$0xff]   ;;  %s205_s26 = smov [#allocation2]  }
   0x6   :  { %v145_v6 = vld [vmem:[%s263_s2] ss:$0 sm:$0xff]  ;;  %s134_s27 = sshll.u32 %s205_s26, 4  ;;  %s135_s27 = int_to_ptr.vmem [resolvable:$true] %s134_s27 }
   0x7   :  { %163 = vmatpush3.bf16.msra.mxu0 %v176_v1  ;;  %s181_s0 = scalar_lea.vmem %s135_s27, 512  ;;  %p186_p1 = scmp.lt.s32.totalorder %s135_s27, %s135_s27 }
   0x8   :  { %164 = vmatprep.subr.bf16.mxu0 %v177_v2  ;;  %p182_p0 = scmp.ne.s32.totalorder %s135_s27, %s181_s0  ;;  %p187_p2 = scmp.lt.s32.totalorder %s181_s0, %s181_s0 }
   0xa   :  { %p188_p3 = por %p187_p2, %p186_p1 }
   0xb   :  { %165 = vmatpush3.bf16.msra.mxu0 %v177_v2 }
   0xc   :  { %166 = vmatprep.subr.bf16.mxu0 %v178_v4  ;;  %p189_p4 = pnand %p188_p3, %p182_p0 }
   0xf   :  { %167 = vmatpush3.bf16.msra.mxu0 %v178_v4 }
  0x12   :  { %169 = vmatmul.mubr.msk.bf16.vlgmr.msra.gmra.mrb[0].mxu0 %vm69_vm0, %v180_v5 }
  0xe5   :  { %v170_v7 = vpop.f32.mrb[0].mxu0 }
  0xe6   :  { %v119_v8 = vadd.f32 %v170_v7, %v145_v6  ;;  %v110_v9 = vpop.f32.mrb[1].mxu0 }
  0xe7   :  { %v111_v10 = vadd.f32 %v145_v6, %v110_v9  ;;  %v171_v11 = vpop.f32.mrb[2].mxu0 }
  0xe8   :  { %127 = vst [vmem:[#allocation2 + $0x10] sm:$0xff] %v119_v8  ;;  %v122_v12 = vadd.f32 %v171_v11, %v145_v6  ;;  %v113_v13 = vpop.f32.mrb[3].mxu0 }
  0xe9   :  { %125 = vst [vmem:[#allocation2] sm:$0xff] %v111_v10  ;;  %v114_v14 = vadd.f32 %v145_v6, %v113_v13 }
  0xea   :  { %128 = vst [vmem:[#allocation2 + $0x18] sm:$0xff] %v122_v12 }
  0xeb   :  { %126 = vst [vmem:[#allocation2 + $0x8] sm:$0xff] %v114_v14 }
  0xec   :  { %192 = shalt.err (!%p189_p4)
}
  0xed   :  { %s193_s28 = scalar_lea.hbm %s264_s3, 512 }
  0xee   :  { %p194_p5 = scmp.ne.s32.totalorder %s264_s3, %s193_s28  ;;  %p197_p6 = scmp.lt.u32.totalorder %s193_s28, %s264_s3 }
  0xf0   :  { %p199_p7 = pnand %p197_p6, %p194_p5 }
  0xf2   :  { %202 = shalt.err (!%p199_p7)
}
  0xf3   :  { %s206_s6 = smov 128   ;;  %s207_s7 = smov 8  }
  0xf4   :  { %140 = dma.vmem_to_hbm [thread:$0]  %s135_s27, 512, %s264_s3, [#allocation3], %s206_s6, %s206_s6, %s207_s7  }
  0xf5   :  { %203 = dma.done.wait [#allocation3], 512  }
  0xf6   :  { %204 = vsyncadd [#allocation3], 4294966784 }
  0xf7   :  { %144 = vsyncpa [#allocation3], 1 }

</bundles_post_ra>
